<compile_context>
chip_gen: v6e
topology: v6e:2x2x1
jax: 0.10.0
libtpu: 0.0.40
codegen_flags: <defaults>
</compile_context>

<pallas_src>
import functools

import jax
import jax.numpy as jnp
from jax.experimental import pallas as pl
from jax.experimental.pallas import tpu as pltpu


# ---------------------------------------------------------------------------
# Pallas kernel: one GCN layer on a row-tile of nodes.
#   out_tile = act( (A_tile @ X) @ W + b )
# ---------------------------------------------------------------------------
def gcn_layer_kernel(a_ref, x_ref, w_ref, b_ref, out_ref, *, activation, valid_cols):
    a = a_ref[...].astype(jnp.bfloat16)          # [TILE_N, N]
    x = x_ref[...].astype(jnp.bfloat16)          # [N, Cin_pad]

    # Aggregate first (narrow channel dim), then project: (A @ X) @ W
    agg = jnp.dot(a, x, preferred_element_type=jnp.float32)          # [TILE_N, Cin_pad]
    w = w_ref[...].astype(jnp.bfloat16)                              # [Cin_pad, Cout_pad]
    z = jnp.dot(agg.astype(jnp.bfloat16), w,
                preferred_element_type=jnp.float32)                  # [TILE_N, Cout_pad]
    z = z + b_ref[...]                                               # bias broadcast (f32)

    if activation == "relu":
        out_ref[...] = jnp.maximum(z, 0.0)
    else:  # "log_softmax" over the lane (feature) dim, padded lanes masked out
        col = jax.lax.broadcasted_iota(jnp.int32, z.shape, dimension=1)
        zm = jnp.where(col < valid_cols, z, -jnp.inf)
        m = jnp.max(zm, axis=1, keepdims=True)
        lse = jnp.log(jnp.sum(jnp.exp(zm - m), axis=1, keepdims=True)) + m
        out_ref[...] = z - lse


def gcn_layer(a_hat, x, w, b, *, activation, valid_cols, tile_n):
    """One GCN layer, row-tiled over nodes. All shapes must be pre-padded:
    a_hat: [Np, Np], x: [Np, Cin_pad], w: [Cin_pad, Cout_pad], b: [1, Cout_pad]."""
    n = a_hat.shape[0]
    cin = x.shape[1]
    cout = w.shape[1]
    assert n % tile_n == 0

    kernel = functools.partial(
        gcn_layer_kernel, activation=activation, valid_cols=valid_cols
    )
    return pl.pallas_call(
        kernel,
        out_shape=jax.ShapeDtypeStruct((n, cout), jnp.float32),
        grid=(n // tile_n,),
        in_specs=[
            pl.BlockSpec((tile_n, n), lambda i: (i, 0)),   # A_hat row tile (streamed)
            pl.BlockSpec((n, cin), lambda i: (0, 0)),      # X: resident across grid
            pl.BlockSpec((cin, cout), lambda i: (0, 0)),   # W: resident
            pl.BlockSpec((1, cout), lambda i: (0, 0)),     # b: resident
        ],
        out_specs=pl.BlockSpec((tile_n, cout), lambda i: (i, 0)),
        compiler_params=pltpu.CompilerParams(
            dimension_semantics=("parallel",),
        ),
    )(a_hat, x, w, b)


# ---------------------------------------------------------------------------
# Wrapper: pad to TPU-friendly shapes, run two layer kernels, slice back.
# ---------------------------------------------------------------------------
def _round_up(v, m):
    return ((v + m - 1) // m) * m


def _pad2(x, target_shape):
    return jnp.pad(
        x, ((0, target_shape[0] - x.shape[0]), (0, target_shape[1] - x.shape[1]))
    )


def gcn_forward(a_hat, x, w1, b1, w2, b2, *, tile_n=8, lane=128):
    # For large graphs use tile_n ~ 256-512; demo uses 8 so the grid still has
    # multiple parallel steps at N=16.
    n, cin = x.shape
    hid = w1.shape[1]
    out_c = w2.shape[1]

    n_p = _round_up(n, tile_n)
    cin_p = _round_up(cin, lane)
    hid_p = _round_up(hid, lane)
    out_p = _round_up(out_c, lane)

    a_p = _pad2(a_hat, (n_p, n_p))
    x_p = _pad2(x, (n_p, cin_p))
    w1_p = _pad2(w1, (cin_p, hid_p))
    b1_p = _pad2(b1, (1, hid_p))
    w2_p = _pad2(w2, (hid_p, out_p))
    b2_p = _pad2(b2, (1, out_p))

    # Layer 1: ReLU( (A @ X) @ W1 + b1 )   -- padded hidden lanes stay exactly 0
    h = gcn_layer(a_p, x_p, w1_p, b1_p,
                  activation="relu", valid_cols=hid_p, tile_n=tile_n)
    # Layer 2: log_softmax( (A @ H) @ W2 + b2 ) with padded lanes masked
    z = gcn_layer(a_p, h, w2_p, b2_p,
                  activation="log_softmax", valid_cols=out_c, tile_n=tile_n)
    return z[:n, :out_c]


# ---------------------------------------------------------------------------
# Graph / parameter construction (plain JAX glue)
# ---------------------------------------------------------------------------
def build_normalized_adjacency(edge_index, num_nodes):
    """Dense D^{-1/2}(A+I)D^{-1/2}, matching PyG GCNConv default normalization
    (for simple graphs without pre-existing self-loops)."""
    src, dst = edge_index[0], edge_index[1]
    loop = jnp.arange(num_nodes, dtype=edge_index.dtype)
    src = jnp.concatenate([src, loop])
    dst = jnp.concatenate([dst, loop])
    a = jnp.zeros((num_nodes, num_nodes), jnp.float32).at[dst, src].add(1.0)
    deg = a.sum(axis=1)
    d_inv_sqrt = jnp.where(deg > 0, 1.0 / jnp.sqrt(deg), 0.0)
    return d_inv_sqrt[:, None] * a * d_inv_sqrt[None, :]


def init_params(key, in_channels, hidden, out_channels):
    k1, k2 = jax.random.split(key)
    lim1 = jnp.sqrt(6.0 / (in_channels + hidden))
    lim2 = jnp.sqrt(6.0 / (hidden + out_channels))
    w1 = jax.random.uniform(k1, (in_channels, hidden), jnp.float32, -lim1, lim1)
    w2 = jax.random.uniform(k2, (hidden, out_channels), jnp.float32, -lim2, lim2)
    b1 = jnp.zeros((1, hidden), jnp.float32)
    b2 = jnp.zeros((1, out_channels), jnp.float32)
    return w1, b1, w2, b2


def gcn_reference(a_hat, x, w1, b1, w2, b2):
    """Pure-JAX f32 reference of the original forward."""
    h = jnp.maximum(a_hat @ (x @ w1) + b1, 0.0)
    z = a_hat @ (h @ w2) + b2
    return jax.nn.log_softmax(z, axis=1)


if __name__ == "__main__":
    N, IN_C, HIDDEN, OUT_C = 16, 8, 64, 4

    key = jax.random.PRNGKey(0)
    kx, kp = jax.random.split(key)

    # Node features [N, IN_C]
    x = jax.random.normal(kx, (N, IN_C), jnp.float32)

    # Deterministic undirected ring graph: edges i <-> (i+1) mod N  => [2, 2N]
    i = jnp.arange(N, dtype=jnp.int32)
    j = (i + 1) % N
    edge_index = jnp.stack(
        [jnp.concatenate([i, j]), jnp.concatenate([j, i])], axis=0
    )

    a_hat = build_normalized_adjacency(edge_index, N)
    w1, b1, w2, b2 = init_params(kp, IN_C, HIDDEN, OUT_C)

    out = gcn_forward(a_hat, x, w1, b1, w2, b2, tile_n=8)
    out = jax.block_until_ready(out)

    ref = gcn_reference(a_hat, x, w1, b1, w2, b2)

    assert out.shape == (N, OUT_C)
    assert bool(jnp.all(jnp.isfinite(out)))
    # log_softmax rows exponentiate/sum to 1
    assert bool(jnp.allclose(jnp.exp(out).sum(axis=1), 1.0, atol=1e-3))
    # matches the f32 reference within bf16-matmul tolerance
    assert bool(jnp.allclose(out, ref, atol=5e-2, rtol=5e-2))
    print("KERNEL_OK")
</pallas_src>

<mosaic_0001>
module attributes {stable_mosaic.version = 11 : i64} {
  func.func @gcn_layer_kernel(%arg0: i32, %arg1: memref<8x16xf32, #tpu.memory_space<vmem>>, %arg2: memref<16x128xf32, #tpu.memory_space<vmem>>, %arg3: memref<128x128xf32, #tpu.memory_space<vmem>>, %arg4: memref<1x128xf32, #tpu.memory_space<vmem>>, %arg5: memref<8x128xf32, #tpu.memory_space<vmem>>) attributes {dimension_semantics = [#tpu.dimension_semantics<parallel>], iteration_bounds = array<i64: 2>, scalar_prefetch = 0 : i64, scratch_operands = 0 : i64, tpu.core_type = #tpu.core_type<tc>, window_params = [{transform_indices = @transform_0, window_bounds = array<i64: 8, 16>}, {pipeline_mode = #tpu.pipeline_mode<synchronous>, transform_indices = @transform_1, window_bounds = array<i64: 16, 128>}, {pipeline_mode = #tpu.pipeline_mode<synchronous>, transform_indices = @transform_2, window_bounds = array<i64: 128, 128>}, {pipeline_mode = #tpu.pipeline_mode<synchronous>, transform_indices = @transform_3, window_bounds = array<i64: 1, 128>}, {transform_indices = @transform_4, window_bounds = array<i64: 8, 128>}]} {
    %c0 = arith.constant 0 : index
    %c0_0 = arith.constant 0 : index
    %0 = vector.load %arg1[%c0, %c0_0] : memref<8x16xf32, #tpu.memory_space<vmem>>, vector<8x16xf32>
    %1 = arith.truncf %0 : vector<8x16xf32> to vector<8x16xbf16>
    %c0_1 = arith.constant 0 : index
    %c0_2 = arith.constant 0 : index
    %2 = vector.load %arg2[%c0_1, %c0_2] : memref<16x128xf32, #tpu.memory_space<vmem>>, vector<16x128xf32>
    %3 = arith.truncf %2 : vector<16x128xf32> to vector<16x128xbf16>
    %cst = arith.constant dense<0.000000e+00> : vector<8x128xf32>
    %4 = tpu.matmul %1, %3, %cst {dimension_numbers = #tpu.dot_dimension_numbers<[1], [0], [0], [1], [0, 0, 1, 1], [], []>} : vector<8x16xbf16>, vector<16x128xbf16>, vector<8x128xf32> -> vector<8x128xf32>
    %c0_3 = arith.constant 0 : index
    %c0_4 = arith.constant 0 : index
    %5 = vector.load %arg3[%c0_3, %c0_4] : memref<128x128xf32, #tpu.memory_space<vmem>>, vector<128x128xf32>
    %6 = arith.truncf %5 : vector<128x128xf32> to vector<128x128xbf16>
    %7 = arith.truncf %4 : vector<8x128xf32> to vector<8x128xbf16>
    %cst_5 = arith.constant dense<0.000000e+00> : vector<8x128xf32>
    %8 = tpu.matmul %7, %6, %cst_5 {dimension_numbers = #tpu.dot_dimension_numbers<[1], [0], [0], [1], [0, 0, 1, 1], [], []>} : vector<8x128xbf16>, vector<128x128xbf16>, vector<8x128xf32> -> vector<8x128xf32>
    %c0_6 = arith.constant 0 : index
    %c0_7 = arith.constant 0 : index
    %9 = vector.load %arg4[%c0_6, %c0_7] : memref<1x128xf32, #tpu.memory_space<vmem>>, vector<1x128xf32>
    %10 = vector.broadcast %9 : vector<1x128xf32> to vector<8x128xf32>
    %11 = arith.addf %8, %10 : vector<8x128xf32>
    %cst_8 = arith.constant 0.000000e+00 : f32
    %12 = vector.broadcast %cst_8 : f32 to vector<8x128xf32>
    %13 = arith.maximumf %11, %12 : vector<8x128xf32>
    %c0_9 = arith.constant 0 : index
    %c0_10 = arith.constant 0 : index
    %14 = vector.load %arg5[%c0_9, %c0_10] : memref<8x128xf32, #tpu.memory_space<vmem>>, vector<8x128xf32>
    tpu.vector_store %arg5[%c0_9, %c0_10], %13 {strides = array<i32>} : memref<8x128xf32, #tpu.memory_space<vmem>>, vector<8x128xf32>,
    return
  }
  func.func @transform_0(%arg0: i32) -> (i32, i32) {
    %c0_i32 = arith.constant 0 : i32
    %c0_i32_0 = arith.constant 0 : i32
    return %arg0, %c0_i32 : i32, i32
  }
  func.func @transform_1(%arg0: i32) -> (i32, i32) {
    %c0_i32 = arith.constant 0 : i32
    %c0_i32_0 = arith.constant 0 : i32
    %c0_i32_1 = arith.constant 0 : i32
    return %c0_i32, %c0_i32_0 : i32, i32
  }
  func.func @transform_2(%arg0: i32) -> (i32, i32) {
    %c0_i32 = arith.constant 0 : i32
    %c0_i32_0 = arith.constant 0 : i32
    %c0_i32_1 = arith.constant 0 : i32
    return %c0_i32, %c0_i32_0 : i32, i32
  }
  func.func @transform_3(%arg0: i32) -> (i32, i32) {
    %c0_i32 = arith.constant 0 : i32
    %c0_i32_0 = arith.constant 0 : i32
    %c0_i32_1 = arith.constant 0 : i32
    return %c0_i32, %c0_i32_0 : i32, i32
  }
  func.func @transform_4(%arg0: i32) -> (i32, i32) {
    %c0_i32 = arith.constant 0 : i32
    %c0_i32_0 = arith.constant 0 : i32
    return %arg0, %c0_i32 : i32, i32
  }
}

</mosaic_0001>

<bundles_post_ra>
// kernel: tpu_custom_call.1
= control target key start
LH: loop header
LB: loop body
LE: loop exit
PB: predicated region body
PF: predicated region fallthrough
CT: control target
= control target key end

     0   :  { %9 = vsyncpa [#allocation3], 0  ;;  %s962_s0 = inlined_call_operand.hbm [shape: f32[16,16], index: 0, kind: input, shape index: {}]   ;;  %s963_s1 = inlined_call_operand.hbm [shape: f32[16,128], index: 1, kind: input, shape index: {}]   ;;  %s964_s2 = inlined_call_operand.hbm [shape: f32[128,128], index: 2, kind: input, shape index: {}]   ;;  %s965_s3 = inlined_call_operand.vmem [shape: f32[1,128], index: 3, kind: input, shape index: {}]   ;;  %s966_s4 = inlined_call_operand.hbm [shape: f32[16,128], index: 4, kind: output, shape index: {}]  }
   0x1   :  { %11 = vsyncpa [#allocation3 + $0x1], 0 }
   0x2   :  { %12 = vsyncpa [#allocation6], 0 }
   0x3   :  { %13 = vsyncpa [#allocation4], 0 }
   0x4   :  { %15 = vsyncpa [#allocation4 + $0x1], 0  ;;  %s778_s15 = smov 0   ;;  %s780_s16 = smov 0  }
   0x5   :  { %s782_s17 = smov 0   ;;  %s784_s18 = smov 0  }
   0x6 LB: > { %s799_s19 = sadd.s32 4294967295, %s743_s18   ;;  %s469_s20 = sadd.s32 4294967294, %s743_s18   ;;  %s743_s18 = sphi %s784_s18, %s988_s18   ;;  %s739_s17 = sphi %s782_s17, %s987_s17   ;;  %s735_s16 = sphi %s780_s16, %s986_s16   ;;  %s731_s15 = sphi %s778_s15, %s985_s15  }
   0x7   : > { %p41_p0 = scmp.ne.s32.totalorder %s735_s16, %s731_s15  ;;  %p967_p1 = scmp.eq.s32.totalorder %s799_s19, 0 }
   0x8   : > { %p134_p3 = scmp.eq.s32.totalorder %s469_s20, 1  ;;  %p470_p5 = scmp.ge.s32.totalorder %s743_s18, 1 }
   0x9   : > { %p808_p4 = por %p967_p1, %p41_p0  ;;  %p141_p7 = scmp.lt.s32.totalorder %s743_s18, 3 }
   0xa   : > { %p813_p6 = por %p134_p3, %p41_p0  ;;  %s745_s24 = smov [#allocation5]  }
   0xb   : > { %s971_s21 = scalar_select %p808_p4, 1, 0 }
   0xc   : > { %s972_s22 = scalar_select %p813_p6, 1, 0 }
   0xd   : > { %p818_p8 = pnand %p470_p5, %p141_p7  ;;  %s153_s25 = sshll.u32 %s745_s24, 4  ;;  %s154_s25 = int_to_ptr.vmem [resolvable:$true] %s153_s25 }
   0xe   : > { %s746_s27 = smov [#allocation7]   ;;  %s606_s29 = scalar_lea.vmem %s154_s25, 256 }
   0xf   : > { %s973_s23 = scalar_select %p818_p8, 1, 0 }
  0x10   : > { %p536_p9 = pneg %p818_p8  ;;  %s166_s28 = sshll.u32 %s746_s27, 4  ;;  %s167_s28 = int_to_ptr.vmem [resolvable:$true] %s166_s28 }
  0x11   : > { %p607_p13 = scmp.ne.s32.totalorder %s154_s25, %s606_s29  ;;  %p614_p5 = scmp.lt.s32.totalorder %s154_s25, %s154_s25 }
  0x12   : > { %p827_p11 = pnand %p536_p9, %p967_p1  ;;  %p615_p7 = scmp.lt.s32.totalorder %s606_s29, %s606_s29 }
  0x14   : > { %p597_p12 = pneg %p827_p11  ;;  %p616_p10 = por %p615_p7, %p614_p5 }
  0x16   : > { %p609_p0 = pnand %p607_p13, %p597_p12 }
  0x18   : > { %p610_p3 = pneg %p609_p0 }
  0x1a   : > { %p617_p9 = pnand %p616_p10, %p610_p3 }
  0x1c   : > { %620 = shalt.err (!%p617_p9)
}
  0x1d   : > { %s747_s30 = smov 128   ;;  %s748_s5 = smov 8  }
  0x1e   : > { %539 = dma.hbm_to_vmem [thread:$0]  (!%p827_p11), %s963_s1, 256, %s154_s25, [#allocation6], %s747_s30, %s747_s30, %s748_s5  }
  0x1f   : > { %s632_s8 = scalar_lea.vmem %s167_s28, 2048  ;;  %p640_p2 = scmp.lt.s32.totalorder %s167_s28, %s167_s28 }
  0x20   : > { %p633_p1 = scmp.ne.s32.totalorder %s167_s28, %s632_s8  ;;  %p641_p6 = scmp.lt.s32.totalorder %s632_s8, %s632_s8 }
  0x22   : > { %p635_p13 = pnand %p633_p1, %p597_p12  ;;  %p642_p5 = por %p641_p6, %p640_p2 }
  0x24   : > { %p636_p0 = pneg %p635_p13 }
  0x26   : > { %p643_p10 = pnand %p642_p5, %p636_p0 }
  0x28   : > { %646 = shalt.err (!%p643_p10)
}
  0x29   : > { %542 = dma.hbm_to_vmem [thread:$0]  (!%p827_p11), %s964_s2, 2048, %s167_s28, [#allocation6], %s747_s30, %s747_s30, %s748_s5  }
  0x2a   : > { %s850_s11 = sadd.s32 1, %s743_s18   ;;  %s28_s12 = sadd.s32 1, %s739_s17 }
  0x2b   : > { %s25_s13 = ssub.s32 %s743_s18, %s850_s11  ;;  %p35_p1 = scmp.ne.s32.totalorder %s739_s17, %s735_s16 }
  0x2c   : > { %p26_p2 = scmp.eq.s32.totalorder %s25_s13, 0  ;;  %p36_p6 = scmp.eq.s32.totalorder %s743_s18, 0 }
  0x2d   : > { %p975_p12 = scmp.eq.s32.totalorder %s799_s19, 1  ;;  %p553_p7 = scmp.lt.s32.totalorder %s743_s18, 2 }
  0x2e   : > { %s866_s20 = scalar_select %p26_p2, %s739_s17, %s28_s12  }
  0x2f   : > { %p860_p3 = por %p975_p12, %p35_p1  ;;  %p37_p9 = por %p36_p6, %p35_p1 }
  0x30   : > { %s183_s24 = sand.u32 1, %s739_s17   ;;  %s475_s26 = sshll.u32 %s743_s18, 7 }
  0x31   : > { %s976_s14 = scalar_select %p860_p3, 1, 0 }
  0x32   : > { %s474_s25 = sshll.u32 %s183_s24, 3  ;;  %s873_s29 = scalar_lea.hbm %s962_s0, %s475_s26 }
  0x33   : > { %s187_s30 = scalar_lea.vmem [#allocation2], %s474_s25  ;;  %p875_p11 = pnand %p553_p7, %p37_p9 }
  0x34   : > { %s194_s5 = sshll.u32 %s187_s30, 4  ;;  %s184_s7 = scalar_lea.sflag [#allocation3], %s183_s24  ;;  %s195_s5 = int_to_ptr.vmem [resolvable:$true] %s194_s5 }
  0x35   : > { %s647_s8 = scalar_lea.hbm %s873_s29, 128  ;;  %p649_p0 = pneg %p875_p11 }
  0x36   : > { %p648_p13 = scmp.ne.s32.totalorder %s873_s29, %s647_s8  ;;  %s652_s12 = scalar_lea.hbm %s962_s0, 256 }
  0x37   : > { %p653_p1 = scmp.lt.s32.totalorder %s873_s29, %s962_s0  ;;  %p654_p2 = scmp.lt.s32.totalorder %s652_s12, %s647_s8 }
  0x38   : > { %p650_p5 = pnand %p649_p0, %p648_p13 }
  0x39   : > { %p655_p6 = por %p654_p2, %p653_p1 }
  0x3a   : > { %p651_p10 = pneg %p650_p5 }
  0x3c   : > { %p656_p12 = pnand %p655_p6, %p651_p10 }
  0x3e   : > { %659 = shalt.err (!%p656_p12)
}
  0x3f   : > { %s660_s26 = scalar_lea.vmem %s195_s5, 128  ;;  %s749_s24 = smov [#allocation2]  }
  0x40   : > { %p661_p7 = scmp.ne.s32.totalorder %s195_s5, %s660_s26  ;;  %s665_s27 = sshll.u32 %s749_s24, 4  ;;  %s666_s27 = int_to_ptr.vmem [resolvable:$false] %s665_s27 }
  0x41   : > { %s667_s28 = scalar_lea.vmem %s666_s27, 256  ;;  %p668_p13 = scmp.lt.s32.totalorder %s195_s5, %s666_s27 }
  0x42   : > { %p663_p9 = pnand %p661_p7, %p649_p0  ;;  %p669_p5 = scmp.lt.s32.totalorder %s667_s28, %s660_s26 }
  0x44   : > { %p664_p3 = pneg %p663_p9  ;;  %p670_p4 = por %p669_p5, %p668_p13 }
  0x46   : > { %p671_p8 = pnand %p670_p4, %p664_p3 }
  0x48   : > { %674 = shalt.err (!%p671_p8)
}
  0x49   : > { %546 = dma.hbm_to_vmem [thread:$0]  (!%p875_p11), %s873_s29, 128, %s195_s5, %s184_s7  }
  0x4a   : > { %p978_p10 = scmp.ne.s32.totalorder %s973_s23, 0 }
  0x4b   : > { %s896_s30 = sand.u32 (!%p978_p10), 1, %s735_s16   ;;  %p979_p4 = scmp.ne.s32.totalorder (!%p978_p10), %s971_s21, 0 }
  0x4c   : > { %203 = sbr.rel (%p978_p10) target bundleno = 497 (0x1f1), region = 36  ;;  %s477_s8 = sshll.u32 (!%p978_p10), %s896_s30, 3 }
  0x4d   : > { %s206_s9 = scalar_lea.sflag (!%p978_p10), [#allocation3], %s896_s30  ;;  %s209_s10 = scalar_lea.vmem (!%p978_p10), [#allocation2], %s477_s8 }
  0x51   : > { %718 = dma.done.wait (%p979_p4), %s206_s9, 128  }
  0x52   : > { %720 = vsyncadd (%p979_p4), %s206_s9, 4294967168  ;;  %p980_p8 = scmp.eq.s32.totalorder %s799_s19, 0 }
  0x54   : > { %722 = dma.done.wait (%p980_p8), [#allocation6], 2304   ;;  %p981_p3 = pmov %p980_p8 }
  0x55   : > { %v750_v0 = vmov 0.0   ;;  %vm751_vm0 = vmmov 0   ;;  %v245_v1 = vld [vmem:[#allocation5] sm:$0xff]  ;;  %v246_v2 = vld [vmem:[#allocation5 + $0x8] sm:$0xff]  ;;  %v243_v3 = vld [vmem:[%s209_s10] sm:$0xff]  ;;  %vm248_vm1 = vcmask 130048  }
  0x56   : > { %724 = vsyncadd (%p981_p3), [#allocation6], 4294964992  ;;  %498 = vmatprep.subr.bf16.mxu0 %v750_v0  ;;  %500 = vmatprep.mubr.msk.bf16.mxu0 %vm751_vm0, %v750_v0  ;;  %v247_v4 = vpack.c.bf16 %v246_v2, %v245_v1  ;;  %v306_v5 = vld [vmem:[#allocation7 + $0x70] sm:$0xff]  ;;  %v307_v6 = vld [vmem:[#allocation7 + $0x78] sm:$0xff]  ;;  %v244_v8 = vpack.c.bf16 %v243_v3, %v243_v3  ;;  %s484_s29 = sshll.u32 %s799_s19, 7  ;;  %s241_s5 = scalar_lea.vmem [#allocation8], %s477_s8 }
  0x57   : > { %504 = vmatprep.subr.bf16.mxu1 %v750_v0  ;;  %520 = vmatprep.mubr.msk.bf16.mxu1 %vm751_vm0, %v750_v0  ;;  %v304_v7 = vld [vmem:[#allocation7 + $0x60] sm:$0xff]  ;;  %v315_v9 = vpack.c.bf16 %v307_v6, %v306_v5  ;;  %v305_v10 = vld [vmem:[#allocation7 + $0x68] sm:$0xff]  ;;  %v302_v12 = vld [vmem:[#allocation7 + $0x50] sm:$0xff]  ;;  %s380_s6 = sshll.u32 %s241_s5, 4  ;;  %s919_s13 = scalar_lea.hbm %s966_s4, %s484_s29  ;;  %s921_s6 = int_to_ptr.vmem [resolvable:$true] %s380_s6 }
  0x58   : > { %499 = vmatpush3.bf16.msra.mxu0 %v247_v4  ;;  %v314_v11 = vpack.c.bf16 %v305_v10, %v304_v7  ;;  %v303_v13 = vld [vmem:[#allocation7 + $0x58] sm:$0xff]  ;;  %v300_v15 = vld [vmem:[#allocation7 + $0x40] sm:$0xff]  ;;  %v301_v16 = vld [vmem:[#allocation7 + $0x48] sm:$0xff]  ;;  %s367_s19 = scalar_lea.sflag [#allocation4], %s896_s30  ;;  %s675_s25 = scalar_lea.vmem %s921_s6, 128 }
  0x59   : > { %505 = vmatpush3.bf16.msra.mxu1 %v315_v9  ;;  %v313_v14 = vpack.c.bf16 %v303_v13, %v302_v12  ;;  %v312_v17 = vpack.c.bf16 %v301_v16, %v300_v15  ;;  %v298_v18 = vld [vmem:[#allocation7 + $0x30] sm:$0xff]  ;;  %v299_v19 = vld [vmem:[#allocation7 + $0x38] sm:$0xff]  ;;  %v296_v21 = vld [vmem:[#allocation7 + $0x20] sm:$0xff]  ;;  %p676_p11 = scmp.ne.s32.totalorder %s921_s6, %s675_s25  ;;  %p982_p0 = scmp.ne.s32.totalorder %s976_s14, 0 }
  0x5a   : > { %506 = vmatprep.subr.bf16.mxu1 %v750_v0  ;;  %v311_v20 = vpack.c.bf16 %v299_v19, %v298_v18  ;;  %v297_v22 = vld [vmem:[#allocation7 + $0x28] sm:$0xff]  ;;  %v294_v24 = vld [vmem:[#allocation7 + $0x10] sm:$0xff]  ;;  %v295_v25 = vld [vmem:[#allocation7 + $0x18] sm:$0xff]  ;;  %s752_s26 = smov [#allocation8]  }
  0x5b   : > { %501 = vmatmul.mubr.msk.bf16.vlgmr.msra.gmra.mxu0 %vm248_vm1, %v244_v8  ;;  %v310_v23 = vpack.c.bf16 %v297_v22, %v296_v21  ;;  %v309_v26 = vpack.c.bf16 %v295_v25, %v294_v24  ;;  %v292_v27 = vld [vmem:[#allocation7] sm:$0xff]  ;;  %v293_v28 = vld [vmem:[#allocation7 + $0x8] sm:$0xff]  ;;  %p677_p1 = pnand %p676_p11, %p982_p0  ;;  %s679_s24 = sshll.u32 %s752_s26, 4  ;;  %s680_s24 = int_to_ptr.vmem [resolvable:$false] %s679_s24 }
  0x5c   : > { %v308_v29 = vpack.c.bf16 %v293_v28, %v292_v27  ;;  %v482_v35 = vld [vmem:[%s965_s3] ss:$0 sm:$0xff]  ;;  %s681_s27 = scalar_lea.vmem %s680_s24, 256  ;;  %p682_p6 = scmp.lt.s32.totalorder %s921_s6, %s680_s24 }
  0x5d   : > { %507 = vmatpush3.bf16.msra.mxu1 %v314_v11  ;;  %p678_p2 = pneg %p677_p1  ;;  %p683_p12 = scmp.lt.s32.totalorder %s681_s27, %s675_s25 }
  0x5e   : > { %508 = vmatprep.subr.bf16.mxu1 %v750_v0 }
  0x5f   : > { %p684_p7 = por %p683_p12, %p682_p6 }
  0x61   : > { %509 = vmatpush3.bf16.msra.mxu1 %v313_v14  ;;  %p685_p9 = pnand %p684_p7, %p678_p2 }
  0x62   : > { %510 = vmatprep.subr.bf16.mxu1 %v750_v0 }
  0x65   : > { %511 = vmatpush3.bf16.msra.mxu1 %v312_v17 }
  0x66   : > { %512 = vmatprep.subr.bf16.mxu1 %v750_v0 }
  0x69   : > { %513 = vmatpush3.bf16.msra.mxu1 %v311_v20 }
  0x6a   : > { %514 = vmatprep.subr.bf16.mxu1 %v750_v0 }
  0x6d   : > { %515 = vmatpush3.bf16.msra.mxu1 %v310_v23 }
  0x6e   : > { %516 = vmatprep.subr.bf16.mxu1 %v750_v0 }
  0x71   : > { %517 = vmatpush3.bf16.msra.mxu1 %v309_v26 }
  0x72   : > { %518 = vmatprep.subr.bf16.mxu1 %v750_v0 }
  0x75   : > { %519 = vmatpush3.bf16.msra.mxu1 %v308_v29 }
 0x11b   : > { %v286_v30 = vpop.f32.mrf.mxu0 }
 0x11c   : > { %v316_v31 = vpack.c.bf16 %v286_v30, %v286_v30 }
 0x11d   : > { %v502_v32 = vpop.f32.mrf.mxu0 }
 0x11e   : > { %521 = vmatmul.mubr.bf16.vlgmr.msra.gmra.mxu1 %v316_v31 }
 0x11f   : > { %v289_v33 = vpop.f32.mrf.mxu0 }
 0x121   : > { %v503_v34 = vpop.f32.mrf.mxu0 }
 0x1de   : > { %v358_v36 = vpop.f32.mrf.mxu1 }
 0x1df   : > { %v359_v37 = vadd.f32 %v482_v35, %v358_v36 }
 0x1e0   : > { %v522_v38 = vpop.f32.mrf.mxu1 }
 0x1e1   : > { %v364_v39 = vmax.f32 %v359_v37, 0.0 }
 0x1e2   : > { %v361_v40 = vpop.f32.mrf.mxu1 }
 0x1e3   : > { %365 = vst [vmem:[%s241_s5] sm:$0xff] %v364_v39 }
 0x1e4   : > { %v523_v41 = vpop.f32.mrf.mxu1 }
 0x1e5   : > { %688 = shalt.err (!%p685_p9)
}
 0x1e6   : > { %s689_s28 = scalar_lea.hbm %s919_s13, 128  ;;  %s693_s9 = scalar_lea.hbm %s966_s4, 256 }
 0x1e7   : > { %p690_p13 = scmp.ne.s32.totalorder %s919_s13, %s689_s28  ;;  %p694_p4 = scmp.lt.s32.totalorder %s919_s13, %s966_s4 }
 0x1e8   : > { %p695_p8 = scmp.lt.s32.totalorder %s693_s9, %s689_s28 }
 0x1e9   : > { %p691_p5 = pnand %p690_p13, %p982_p0 }
 0x1ea   : > { %p696_p3 = por %p695_p8, %p694_p4 }
 0x1eb   : > { %p692_p10 = pneg %p691_p5 }
 0x1ed   : > { %p697_p11 = pnand %p696_p3, %p692_p10 }
 0x1ef   : > { %700 = shalt.err (!%p697_p11)
}
 0x1f0   : > { %534 = dma.vmem_to_hbm [thread:$0]  (%p982_p0), %s921_s6, 128, %s919_s13, %s367_s19  }
 0x1f1 PF: > { %s392_s23 = sand.u32 1, %s731_s15   ;;  %p983_p1 = scmp.ne.s32.totalorder %s972_s22, 0 }
 0x1f2   : > { %p984_p2 = scmp.ge.s32.totalorder %s743_s18, 2  ;;  %s393_s29 = scalar_lea.sflag [#allocation4], %s392_s23 }
 0x1f4   : > { %p548_p6 = pnand %p984_p2, %p983_p1 }
 0x1f6   : > { %p549_p12 = pneg %p548_p6 }
 0x1f8   : > { %726 = dma.done.wait (%p549_p12), %s393_s29, 128  }
 0x1f9   : > { %728 = vsyncadd (%p549_p12), %s393_s29, 4294967168  ;;  %p18_p7 = scmp.ge.s32.totalorder %s850_s11, 4   ;;  %s985_s15 = smov %s735_s16 }
 0x1fa   : > { %s986_s16 = smov %s739_s17  ;;  %s987_s17 = smov %s866_s20 }
 0x1fb   : > { %s988_s18 = smov %s850_s11  ;;  %20 = sbr.rel (!%p18_p7) target bundleno = 6 (0x6), region = 89 }
 0x200   :  { %398 = vsyncpa [#allocation3], 1 }
 0x201   :  { %400 = vsyncpa [#allocation3 + $0x1], 1 }
 0x202   :  { %401 = vsyncpa [#allocation6], 1 }
 0x203   :  { %402 = vsyncpa [#allocation4], 1 }
 0x204   :  { %404 = vsyncpa [#allocation4 + $0x1], 1 }

</bundles_post_ra>
